<compile_context>
chip_gen: v7x
topology: tpu7x:2x2x1
jax: 0.10.0
libtpu: 0.0.40
codegen_flags: <defaults>
</compile_context>

<pallas_src>
import jax
import jax.numpy as jnp
from jax.experimental import pallas as pl
from jax.experimental.pallas import tpu as pltpu


def _cdiv(a, b):
    return (a + b - 1) // b


def _round_up(n, m):
    return _cdiv(n, m) * m


# ---------------- in-kernel math (f32 elementwise) ----------------

def _silu(h):
    # sigmoid(x) = 0.5*(tanh(x/2)+1): a single EUP push per vreg.
    return h * (0.5 * (jnp.tanh(0.5 * h) + 1.0))


def _layernorm(h, gamma, beta, eps=1e-5):
    # One-pass statistics: var = E[h^2] - E[h]^2 (no broadcast-subtract pass
    # before the variance reduction, no extra full-tile live temporary).
    m = jnp.mean(h, axis=-1, keepdims=True)
    m2 = jnp.mean(h * h, axis=-1, keepdims=True)
    r = jax.lax.rsqrt(m2 - m * m + eps)
    return (h - m) * r * gamma + beta


def mlp_kernel(x_ref,
               w1_ref, b1_ref,
               w2_ref, b2_ref, g2_ref, be2_ref,
               gf_ref, bef_ref,
               w3_ref, b3_ref,
               o_ref):
    # x tile: (TB, D) f32 straight from HBM; cast to bf16 in VMEM.
    x = x_ref[...].astype(jnp.bfloat16)

    # input_layer + SiLU  (bf16 MXU inputs, f32 accumulate == autocast).
    h = jnp.dot(x, w1_ref[...], preferred_element_type=jnp.float32) + b1_ref[...]
    h = _silu(h)

    # hidden block: Linear -> LayerNorm -> SiLU -> Dropout(identity at eval).
    h = jnp.dot(h.astype(jnp.bfloat16), w2_ref[...],
                preferred_element_type=jnp.float32) + b2_ref[...]
    h = _silu(_layernorm(h, g2_ref[...], be2_ref[...]))

    # final_norm.
    # TODO(synk): if the bundle dump shows XLU as the binding slot, offload the
    # LN row-sum / row-sum-of-squares onto the (idle) MXU via a 2-column constant.
    h = _layernorm(h, gf_ref[...], bef_ref[...])

    # output_layer (64 -> 1) on the MXU (frees the XLU lane-reduce slots).
    y = jnp.dot(h.astype(jnp.bfloat16), w3_ref[...],
                preferred_element_type=jnp.float32) + b3_ref[...]
    o_ref[...] = y


def amd_futures_model_forward(x, params, block_b=4096):
    """x: (B, input_dim) float32.  Returns (B, 1) float32."""
    B, D = x.shape
    (w1, b1, w2, b2, g2, be2, gf, bef, w3, b3) = params
    H1 = w1.shape[1]
    H2 = w2.shape[1]

    # bf16 storage only for the tiny, VMEM-resident MXU weight operands.
    w1b = w1.astype(jnp.bfloat16)
    w2b = w2.astype(jnp.bfloat16)
    w3b = w3.astype(jnp.bfloat16)

    # Batch tile: multiple of 8 (f32 sublane tile).  Default 4096; keep >= 2 tiles
    # when B allows so both v7x TensorCores get work.  No input padding — the grid
    # is cdiv(B, TB) and the ragged last block is handled by Pallas (garbage rows
    # are independent; their output writeback is masked / discarded).
    TB = max(8, min(block_b, _round_up(_cdiv(B, 2), 8)))
    n_tiles = _cdiv(B, TB)
    # VMEM at TB=4096 is a few MiB (x tile + f32 (TB,128)/(TB,64) temporaries),
    # comfortably inside the default scoped limit on v5e/v6e/v7x.  Only raise
    # vmem_limit_bytes if block_b is pushed to ~16-32k (v6e).

    const = lambda a: pl.BlockSpec(a.shape, lambda i: (0, 0))  # VMEM-resident params

    w_bytes = sum(int(a.size) * a.dtype.itemsize
                  for a in (w1b, b1, w2b, b2, g2, be2, gf, bef, w3b, b3))
    cost = pl.CostEstimate(
        flops=2 * B * (D * H1 + H1 * H2 + H2),
        transcendentals=B * (H1 + H2),
        bytes_accessed=B * D * 4 + B * 4 + w_bytes)

    out = pl.pallas_call(
        mlp_kernel,
        out_shape=jax.ShapeDtypeStruct((B, 1), jnp.float32),
        grid=(n_tiles,),
        in_specs=[
            pl.BlockSpec((TB, D), lambda i: (i, 0)),   # x streams through
            const(w1b), const(b1),
            const(w2b), const(b2), const(g2), const(be2),
            const(gf), const(bef),
            const(w3b), const(b3),
        ],
        out_specs=pl.BlockSpec((TB, 1), lambda i: (i, 0)),
        compiler_params=pltpu.CompilerParams(
            dimension_semantics=("parallel",)),
        cost_estimate=cost,
    )(x, w1b, b1, w2b, b2, g2, be2, gf, bef, w3b, b3)
    return out


# ---------------- parameters & pure-JAX references ----------------

def init_params(key, input_dim, h1=128, h2=64):
    ks = jax.random.split(key, 8)
    # Weights stored transposed vs PyTorch: (in_features, out_features).
    w1 = jax.random.normal(ks[0], (input_dim, h1), jnp.float32) * (2.0 / input_dim) ** 0.5
    b1 = jnp.zeros((1, h1), jnp.float32)
    w2 = jax.random.normal(ks[1], (h1, h2), jnp.float32) * (1.0 / h1) ** 0.5
    b2 = jax.random.normal(ks[2], (1, h2), jnp.float32) * 0.01
    # PyTorch inits LayerNorm affines to ones/zeros; randomize slightly here to
    # exercise the affine paths.
    g2 = 1.0 + 0.1 * jax.random.normal(ks[4], (1, h2), jnp.float32)
    be2 = 0.05 * jax.random.normal(ks[5], (1, h2), jnp.float32)
    gf = 1.0 + 0.1 * jax.random.normal(ks[6], (1, h2), jnp.float32)
    bef = 0.05 * jax.random.normal(ks[7], (1, h2), jnp.float32)
    w3 = jax.random.normal(ks[3], (h2, 1), jnp.float32) * (1.0 / h2) ** 0.5
    b3 = jnp.zeros((1, 1), jnp.float32)            # nn.init.zeros_(output_layer.bias)
    return (w1, b1, w2, b2, g2, be2, gf, bef, w3, b3)


def _silu_ref(h):
    return h * jax.nn.sigmoid(h)


def _layernorm_ref(h, gamma, beta, eps=1e-5):
    mean = jnp.mean(h, axis=-1, keepdims=True)
    var = jnp.mean((h - mean) ** 2, axis=-1, keepdims=True)
    return (h - mean) * jax.lax.rsqrt(var + eps) * gamma + beta


def reference_forward(x, params):
    """Pure-f32 reference (module semantics without autocast)."""
    (w1, b1, w2, b2, g2, be2, gf, bef, w3, b3) = params
    h = _silu_ref(x @ w1 + b1)
    h = _silu_ref(_layernorm_ref(h @ w2 + b2, g2, be2))
    h = _layernorm_ref(h, gf, bef)
    return h @ w3 + b3


def reference_forward_bf16(x, params):
    """Autocast-matched reference: bf16 matmul inputs, f32 accumulate/elementwise."""
    (w1, b1, w2, b2, g2, be2, gf, bef, w3, b3) = params
    bf16 = jnp.bfloat16
    h = _silu_ref(jnp.dot(x.astype(bf16), w1.astype(bf16),
                          preferred_element_type=jnp.float32) + b1)
    h = jnp.dot(h.astype(bf16), w2.astype(bf16),
                preferred_element_type=jnp.float32) + b2
    h = _silu_ref(_layernorm_ref(h, g2, be2))
    h = _layernorm_ref(h, gf, bef)
    return jnp.dot(h.astype(bf16), w3.astype(bf16),
                   preferred_element_type=jnp.float32) + b3


if __name__ == "__main__":
    key = jax.random.PRNGKey(0)
    k_x, k_p, k_x2 = jax.random.split(key, 3)

    B, input_dim = 8, 32
    x = jax.random.normal(k_x, (B, input_dim), jnp.float32)
    params = init_params(k_p, input_dim)

    out = jax.block_until_ready(amd_futures_model_forward(x, params))
    assert out.shape == (B, 1)
    ref_bf16 = reference_forward_bf16(x, params)
    ref_f32 = reference_forward(x, params)
    assert jnp.allclose(out, ref_bf16, atol=2e-3, rtol=2e-3)
    assert jnp.allclose(out, ref_f32, atol=5e-2, rtol=5e-2)

    # Multi-tile + ragged-last-block path: 3 tiles of 128 rows over B=300 (no
    # jnp.pad; the 44 garbage rows of the last tile are row-independent and their
    # output writeback is masked).
    B2 = 300
    x2 = jax.random.normal(k_x2, (B2, input_dim), jnp.float32)
    out2 = jax.block_until_ready(amd_futures_model_forward(x2, params, block_b=128))
    assert out2.shape == (B2, 1)
    assert jnp.allclose(out2, reference_forward_bf16(x2, params), atol=2e-3, rtol=2e-3)

    print("KERNEL_OK")
</pallas_src>

<mosaic_0001>
module attributes {stable_mosaic.version = 11 : i64} {
  func.func @mlp_kernel(%arg0: i32, %arg1: memref<8x32xf32, #tpu.memory_space<vmem>>, %arg2: memref<32x128xbf16, #tpu.memory_space<vmem>>, %arg3: memref<1x128xf32, #tpu.memory_space<vmem>>, %arg4: memref<128x64xbf16, #tpu.memory_space<vmem>>, %arg5: memref<1x64xf32, #tpu.memory_space<vmem>>, %arg6: memref<1x64xf32, #tpu.memory_space<vmem>>, %arg7: memref<1x64xf32, #tpu.memory_space<vmem>>, %arg8: memref<1x64xf32, #tpu.memory_space<vmem>>, %arg9: memref<1x64xf32, #tpu.memory_space<vmem>>, %arg10: memref<64x1xbf16, #tpu.memory_space<vmem>>, %arg11: memref<1x1xf32, #tpu.memory_space<vmem>>, %arg12: memref<8x1xf32, #tpu.memory_space<vmem>>) attributes {dimension_semantics = [#tpu.dimension_semantics<parallel>], iteration_bounds = array<i64: 1>, scalar_prefetch = 0 : i64, scratch_operands = 0 : i64, tpu.core_type = #tpu.core_type<tc>, window_params = [{transform_indices = @transform_0, window_bounds = array<i64: 8, 32>}, {pipeline_mode = #tpu.pipeline_mode<synchronous>, transform_indices = @transform_1, window_bounds = array<i64: 32, 128>}, {pipeline_mode = #tpu.pipeline_mode<synchronous>, transform_indices = @transform_2, window_bounds = array<i64: 1, 128>}, {pipeline_mode = #tpu.pipeline_mode<synchronous>, transform_indices = @transform_3, window_bounds = array<i64: 128, 64>}, {pipeline_mode = #tpu.pipeline_mode<synchronous>, transform_indices = @transform_4, window_bounds = array<i64: 1, 64>}, {pipeline_mode = #tpu.pipeline_mode<synchronous>, transform_indices = @transform_5, window_bounds = array<i64: 1, 64>}, {pipeline_mode = #tpu.pipeline_mode<synchronous>, transform_indices = @transform_6, window_bounds = array<i64: 1, 64>}, {pipeline_mode = #tpu.pipeline_mode<synchronous>, transform_indices = @transform_7, window_bounds = array<i64: 1, 64>}, {pipeline_mode = #tpu.pipeline_mode<synchronous>, transform_indices = @transform_8, window_bounds = array<i64: 1, 64>}, {pipeline_mode = #tpu.pipeline_mode<synchronous>, transform_indices = @transform_9, window_bounds = array<i64: 64, 1>}, {pipeline_mode = #tpu.pipeline_mode<synchronous>, transform_indices = @transform_10, window_bounds = array<i64: 1, 1>}, {transform_indices = @transform_11, window_bounds = array<i64: 8, 1>}]} {
    %c0 = arith.constant 0 : index
    %c0_0 = arith.constant 0 : index
    %0 = vector.load %arg1[%c0, %c0_0] : memref<8x32xf32, #tpu.memory_space<vmem>>, vector<8x32xf32>
    %1 = arith.truncf %0 : vector<8x32xf32> to vector<8x32xbf16>
    %c0_1 = arith.constant 0 : index
    %c0_2 = arith.constant 0 : index
    %2 = vector.load %arg2[%c0_1, %c0_2] : memref<32x128xbf16, #tpu.memory_space<vmem>>, vector<32x128xbf16>
    %cst = arith.constant dense<0.000000e+00> : vector<8x128xf32>
    %3 = tpu.matmul %1, %2, %cst {dimension_numbers = #tpu.dot_dimension_numbers<[1], [0], [0], [1], [0, 0, 1, 1], [], []>} : vector<8x32xbf16>, vector<32x128xbf16>, vector<8x128xf32> -> vector<8x128xf32>
    %c0_3 = arith.constant 0 : index
    %c0_4 = arith.constant 0 : index
    %4 = vector.load %arg3[%c0_3, %c0_4] : memref<1x128xf32, #tpu.memory_space<vmem>>, vector<1x128xf32>
    %5 = vector.broadcast %4 : vector<1x128xf32> to vector<8x128xf32>
    %6 = arith.addf %3, %5 : vector<8x128xf32>
    %cst_5 = arith.constant 5.000000e-01 : f32
    %7 = vector.broadcast %cst_5 : f32 to vector<8x128xf32>
    %8 = arith.mulf %7, %6 : vector<8x128xf32>
    %9 = math.tanh %8 : vector<8x128xf32>
    %cst_6 = arith.constant 1.000000e+00 : f32
    %10 = vector.broadcast %cst_6 : f32 to vector<8x128xf32>
    %11 = arith.addf %9, %10 : vector<8x128xf32>
    %cst_7 = arith.constant 5.000000e-01 : f32
    %12 = vector.broadcast %cst_7 : f32 to vector<8x128xf32>
    %13 = arith.mulf %12, %11 : vector<8x128xf32>
    %14 = arith.mulf %6, %13 : vector<8x128xf32>
    %15 = arith.truncf %14 : vector<8x128xf32> to vector<8x128xbf16>
    %c0_8 = arith.constant 0 : index
    %c0_9 = arith.constant 0 : index
    %16 = vector.load %arg4[%c0_8, %c0_9] : memref<128x64xbf16, #tpu.memory_space<vmem>>, vector<128x64xbf16>
    %cst_10 = arith.constant dense<0.000000e+00> : vector<8x64xf32>
    %17 = tpu.matmul %15, %16, %cst_10 {dimension_numbers = #tpu.dot_dimension_numbers<[1], [0], [0], [1], [0, 0, 1, 1], [], []>} : vector<8x128xbf16>, vector<128x64xbf16>, vector<8x64xf32> -> vector<8x64xf32>
    %c0_11 = arith.constant 0 : index
    %c0_12 = arith.constant 0 : index
    %18 = vector.load %arg5[%c0_11, %c0_12] : memref<1x64xf32, #tpu.memory_space<vmem>>, vector<1x64xf32>
    %19 = vector.broadcast %18 : vector<1x64xf32> to vector<8x64xf32>
    %20 = arith.addf %17, %19 : vector<8x64xf32>
    %c0_13 = arith.constant 0 : index
    %c0_14 = arith.constant 0 : index
    %21 = vector.load %arg6[%c0_13, %c0_14] : memref<1x64xf32, #tpu.memory_space<vmem>>, vector<1x64xf32>
    %c0_15 = arith.constant 0 : index
    %c0_16 = arith.constant 0 : index
    %22 = vector.load %arg7[%c0_15, %c0_16] : memref<1x64xf32, #tpu.memory_space<vmem>>, vector<1x64xf32>
    %cst_17 = arith.constant dense<0.000000e+00> : vector<8xf32>
    %23 = vector.multi_reduction <add>, %20, %cst_17 [1] : vector<8x64xf32> to vector<8xf32>
    %24 = vector.shape_cast %23 : vector<8xf32> to vector<8x1xf32>
    %cst_18 = arith.constant 6.400000e+01 : f32
    %25 = vector.broadcast %cst_18 : f32 to vector<8x1xf32>
    %26 = arith.divf %24, %25 : vector<8x1xf32>
    %27 = arith.mulf %20, %20 : vector<8x64xf32>
    %cst_19 = arith.constant dense<0.000000e+00> : vector<8xf32>
    %28 = vector.multi_reduction <add>, %27, %cst_19 [1] : vector<8x64xf32> to vector<8xf32>
    %29 = vector.shape_cast %28 : vector<8xf32> to vector<8x1xf32>
    %cst_20 = arith.constant 6.400000e+01 : f32
    %30 = vector.broadcast %cst_20 : f32 to vector<8x1xf32>
    %31 = arith.divf %29, %30 : vector<8x1xf32>
    %32 = arith.mulf %26, %26 : vector<8x1xf32>
    %33 = arith.subf %31, %32 : vector<8x1xf32>
    %cst_21 = arith.constant 9.99999974E-6 : f32
    %34 = vector.broadcast %cst_21 : f32 to vector<8x1xf32>
    %35 = arith.addf %33, %34 : vector<8x1xf32>
    %36 = math.rsqrt %35 : vector<8x1xf32>
    %37 = vector.broadcast %26 : vector<8x1xf32> to vector<8x64xf32>
    %38 = arith.subf %20, %37 : vector<8x64xf32>
    %39 = vector.broadcast %36 : vector<8x1xf32> to vector<8x64xf32>
    %40 = arith.mulf %38, %39 : vector<8x64xf32>
    %41 = vector.broadcast %21 : vector<1x64xf32> to vector<8x64xf32>
    %42 = arith.mulf %40, %41 : vector<8x64xf32>
    %43 = vector.broadcast %22 : vector<1x64xf32> to vector<8x64xf32>
    %44 = arith.addf %42, %43 : vector<8x64xf32>
    %cst_22 = arith.constant 5.000000e-01 : f32
    %45 = vector.broadcast %cst_22 : f32 to vector<8x64xf32>
    %46 = arith.mulf %45, %44 : vector<8x64xf32>
    %47 = math.tanh %46 : vector<8x64xf32>
    %cst_23 = arith.constant 1.000000e+00 : f32
    %48 = vector.broadcast %cst_23 : f32 to vector<8x64xf32>
    %49 = arith.addf %47, %48 : vector<8x64xf32>
    %cst_24 = arith.constant 5.000000e-01 : f32
    %50 = vector.broadcast %cst_24 : f32 to vector<8x64xf32>
    %51 = arith.mulf %50, %49 : vector<8x64xf32>
    %52 = arith.mulf %44, %51 : vector<8x64xf32>
    %c0_25 = arith.constant 0 : index
    %c0_26 = arith.constant 0 : index
    %53 = vector.load %arg8[%c0_25, %c0_26] : memref<1x64xf32, #tpu.memory_space<vmem>>, vector<1x64xf32>
    %c0_27 = arith.constant 0 : index
    %c0_28 = arith.constant 0 : index
    %54 = vector.load %arg9[%c0_27, %c0_28] : memref<1x64xf32, #tpu.memory_space<vmem>>, vector<1x64xf32>
    %cst_29 = arith.constant dense<0.000000e+00> : vector<8xf32>
    %55 = vector.multi_reduction <add>, %52, %cst_29 [1] : vector<8x64xf32> to vector<8xf32>
    %56 = vector.shape_cast %55 : vector<8xf32> to vector<8x1xf32>
    %cst_30 = arith.constant 6.400000e+01 : f32
    %57 = vector.broadcast %cst_30 : f32 to vector<8x1xf32>
    %58 = arith.divf %56, %57 : vector<8x1xf32>
    %59 = arith.mulf %52, %52 : vector<8x64xf32>
    %cst_31 = arith.constant dense<0.000000e+00> : vector<8xf32>
    %60 = vector.multi_reduction <add>, %59, %cst_31 [1] : vector<8x64xf32> to vector<8xf32>
    %61 = vector.shape_cast %60 : vector<8xf32> to vector<8x1xf32>
    %cst_32 = arith.constant 6.400000e+01 : f32
    %62 = vector.broadcast %cst_32 : f32 to vector<8x1xf32>
    %63 = arith.divf %61, %62 : vector<8x1xf32>
    %64 = arith.mulf %58, %58 : vector<8x1xf32>
    %65 = arith.subf %63, %64 : vector<8x1xf32>
    %cst_33 = arith.constant 9.99999974E-6 : f32
    %66 = vector.broadcast %cst_33 : f32 to vector<8x1xf32>
    %67 = arith.addf %65, %66 : vector<8x1xf32>
    %68 = math.rsqrt %67 : vector<8x1xf32>
    %69 = vector.broadcast %58 : vector<8x1xf32> to vector<8x64xf32>
    %70 = arith.subf %52, %69 : vector<8x64xf32>
    %71 = vector.broadcast %68 : vector<8x1xf32> to vector<8x64xf32>
    %72 = arith.mulf %70, %71 : vector<8x64xf32>
    %73 = vector.broadcast %53 : vector<1x64xf32> to vector<8x64xf32>
    %74 = arith.mulf %72, %73 : vector<8x64xf32>
    %75 = vector.broadcast %54 : vector<1x64xf32> to vector<8x64xf32>
    %76 = arith.addf %74, %75 : vector<8x64xf32>
    %77 = arith.truncf %76 : vector<8x64xf32> to vector<8x64xbf16>
    %c0_34 = arith.constant 0 : index
    %c0_35 = arith.constant 0 : index
    %78 = vector.load %arg10[%c0_34, %c0_35] : memref<64x1xbf16, #tpu.memory_space<vmem>>, vector<64x1xbf16>
    %cst_36 = arith.constant dense<0.000000e+00> : vector<8x1xf32>
    %79 = tpu.matmul %77, %78, %cst_36 {dimension_numbers = #tpu.dot_dimension_numbers<[1], [0], [0], [1], [0, 0, 1, 1], [], []>} : vector<8x64xbf16>, vector<64x1xbf16>, vector<8x1xf32> -> vector<8x1xf32>
    %c0_37 = arith.constant 0 : index
    %c0_38 = arith.constant 0 : index
    %80 = vector.load %arg11[%c0_37, %c0_38] : memref<1x1xf32, #tpu.memory_space<vmem>>, vector<1x1xf32>
    %81 = vector.broadcast %80 : vector<1x1xf32> to vector<8x1xf32>
    %82 = arith.addf %79, %81 : vector<8x1xf32>
    %c0_39 = arith.constant 0 : index
    %c0_40 = arith.constant 0 : index
    %83 = vector.load %arg12[%c0_39, %c0_40] : memref<8x1xf32, #tpu.memory_space<vmem>>, vector<8x1xf32>
    tpu.vector_store %arg12[%c0_39, %c0_40], %82 {strides = array<i32>} : memref<8x1xf32, #tpu.memory_space<vmem>>, vector<8x1xf32>,
    return
  }
  func.func @transform_0(%arg0: i32) -> (i32, i32) {
    %c0_i32 = arith.constant 0 : i32
    %c0_i32_0 = arith.constant 0 : i32
    return %arg0, %c0_i32 : i32, i32
  }
  func.func @transform_1(%arg0: i32) -> (i32, i32) {
    %c0_i32 = arith.constant 0 : i32
    %c0_i32_0 = arith.constant 0 : i32
    %c0_i32_1 = arith.constant 0 : i32
    return %c0_i32, %c0_i32_0 : i32, i32
  }
  func.func @transform_2(%arg0: i32) -> (i32, i32) {
    %c0_i32 = arith.constant 0 : i32
    %c0_i32_0 = arith.constant 0 : i32
    %c0_i32_1 = arith.constant 0 : i32
    return %c0_i32, %c0_i32_0 : i32, i32
  }
  func.func @transform_3(%arg0: i32) -> (i32, i32) {
    %c0_i32 = arith.constant 0 : i32
    %c0_i32_0 = arith.constant 0 : i32
    %c0_i32_1 = arith.constant 0 : i32
    return %c0_i32, %c0_i32_0 : i32, i32
  }
  func.func @transform_4(%arg0: i32) -> (i32, i32) {
    %c0_i32 = arith.constant 0 : i32
    %c0_i32_0 = arith.constant 0 : i32
    %c0_i32_1 = arith.constant 0 : i32
    return %c0_i32, %c0_i32_0 : i32, i32
  }
  func.func @transform_5(%arg0: i32) -> (i32, i32) {
    %c0_i32 = arith.constant 0 : i32
    %c0_i32_0 = arith.constant 0 : i32
    %c0_i32_1 = arith.constant 0 : i32
    return %c0_i32, %c0_i32_0 : i32, i32
  }
  func.func @transform_6(%arg0: i32) -> (i32, i32) {
    %c0_i32 = arith.constant 0 : i32
    %c0_i32_0 = arith.constant 0 : i32
    %c0_i32_1 = arith.constant 0 : i32
    return %c0_i32, %c0_i32_0 : i32, i32
  }
  func.func @transform_7(%arg0: i32) -> (i32, i32) {
    %c0_i32 = arith.constant 0 : i32
    %c0_i32_0 = arith.constant 0 : i32
    %c0_i32_1 = arith.constant 0 : i32
    return %c0_i32, %c0_i32_0 : i32, i32
  }
  func.func @transform_8(%arg0: i32) -> (i32, i32) {
    %c0_i32 = arith.constant 0 : i32
    %c0_i32_0 = arith.constant 0 : i32
    %c0_i32_1 = arith.constant 0 : i32
    return %c0_i32, %c0_i32_0 : i32, i32
  }
  func.func @transform_9(%arg0: i32) -> (i32, i32) {
    %c0_i32 = arith.constant 0 : i32
    %c0_i32_0 = arith.constant 0 : i32
    %c0_i32_1 = arith.constant 0 : i32
    return %c0_i32, %c0_i32_0 : i32, i32
  }
  func.func @transform_10(%arg0: i32) -> (i32, i32) {
    %c0_i32 = arith.constant 0 : i32
    %c0_i32_0 = arith.constant 0 : i32
    %c0_i32_1 = arith.constant 0 : i32
    return %c0_i32, %c0_i32_0 : i32, i32
  }
  func.func @transform_11(%arg0: i32) -> (i32, i32) {
    %c0_i32 = arith.constant 0 : i32
    %c0_i32_0 = arith.constant 0 : i32
    return %arg0, %c0_i32 : i32, i32
  }
}

</mosaic_0001>

<bundles_post_ra>
// kernel: tpu_custom_call.1
= control target key start
LH: loop header
LB: loop body
LE: loop exit
PB: predicated region body
PF: predicated region fallthrough
CT: control target
= control target key end

     0   :  { %v489_v0 = vmov 0.0   ;;  %vm490_vm0 = vmmov 0   ;;  %vm66_vm1 = vcmask 261120   ;;  %vm229_vm2 = vcmask 523264   ;;  %s645_s1 = inlined_call_operand.vmem [shape: bf16[32,128], index: 1, kind: input, shape index: {}]   ;;  %s646_s0 = inlined_call_operand.vmem [shape: f32[8,32], index: 0, kind: input, shape index: {}]   ;;  %s647_s3 = inlined_call_operand.vmem [shape: bf16[128,64], index: 3, kind: input, shape index: {}]   ;;  %s648_s2 = inlined_call_operand.vmem [shape: f32[1,128], index: 2, kind: input, shape index: {}]   ;;  %s649_s4 = inlined_call_operand.vmem [shape: f32[1,64], index: 4, kind: input, shape index: {}]   ;;  %s650_s5 = inlined_call_operand.vmem [shape: f32[1,64], index: 5, kind: input, shape index: {}]   ;;  %s651_s6 = inlined_call_operand.vmem [shape: f32[1,64], index: 6, kind: input, shape index: {}]   ;;  %s652_s9 = inlined_call_operand.vmem [shape: bf16[64,1], index: 9, kind: input, shape index: {}]   ;;  %s653_s10 = inlined_call_operand.<no memory space> [shape: f32[1,1], index: 10, kind: input, shape index: {}]   ;;  %s654_s7 = inlined_call_operand.vmem [shape: f32[1,64], index: 7, kind: input, shape index: {}]   ;;  %s655_s8 = inlined_call_operand.vmem [shape: f32[1,64], index: 8, kind: input, shape index: {}]   ;;  %s656_s11 = inlined_call_operand.vmem [shape: f32[8,1], index: 11, kind: output, shape index: {}]  }
   0x1   :  { %425 = vmatprep.subr.bf16.mxu0 %v489_v0  ;;  %v467_v1 = vld [vmem:[%s645_s1] sm:$0xff]   ;;  %429 = vmatprep.mubr.msk.bf16.mxu0 %vm490_vm0, %v489_v0  ;;  %v468_v2 = vld [vmem:[%s645_s1 + $0x8] sm:$0xff]   ;;  %v471_v7 = vld [vmem:[%s647_s3 + $0x10] sm:$0xff]   ;;  %v16_v60 = vstv %s653_s10  ;;  %vm379_vm3 = vcmask 7168  }
   0x2   :  { %433 = vmatprep.subr.bf16.mxu1 %v489_v0  ;;  %449 = vmatprep.mubr.msk.bf16.mxu1 %vm490_vm0, %v489_v0  ;;  %v41_v3 = vld [vmem:[%s646_s0] sm:$0xff]  ;;  %v470_v5 = vld [vmem:[%s647_s3 + $0x8] sm:$0xff]   ;;  %v472_v8 = vld [vmem:[%s647_s3 + $0x18] sm:$0xff]   ;;  %17 = vst [vmem:[#allocation2] sm:$0x1] %v16_v60 }
   0x3   :  { %426 = vmatpush3.bf16.msra.mxu0 %v467_v1  ;;  %v469_v4 = vld [vmem:[%s647_s3] sm:$0xff]   ;;  %v42_v6 = vpack.c.bf16 %v41_v3, %v41_v3  ;;  %v474_v10 = vld [vmem:[%s647_s3 + $0x28] sm:$0xff]   ;;  %v475_v11 = vld [vmem:[%s647_s3 + $0x30] sm:$0xff]  }
   0x4   :  { %427 = vmatprep.subr.bf16.mxu0 %v489_v0  ;;  %434 = vmatpush3.bf16.msra.mxu1 %v469_v4  ;;  %v473_v9 = vld [vmem:[%s647_s3 + $0x20] sm:$0xff]   ;;  %v476_v12 = vld [vmem:[%s647_s3 + $0x38] sm:$0xff]   ;;  %v478_v57 = vld [vmem:[%s652_s9 + $0x8] sm:$0xff]  }
   0x5   :  { %435 = vmatprep.subr.bf16.mxu1 %v489_v0  ;;  %v385_v13 = vld [vmem:[%s648_s2] ss:$0 sm:$0xff]  ;;  %v479_v58 = vld [vmem:[%s652_s9 + $0x10] sm:$0xff]   ;;  %v480_v59 = vld [vmem:[%s652_s9 + $0x18] sm:$0xff]  }
   0x6   :  { %v389_v25 = vld [vmem:[%s649_s4] ss:$0 sm:$0xff] }
   0x7   :  { %428 = vmatpush3.bf16.msra.mxu0 %v468_v2  ;;  %v398_v43 = vld [vmem:[%s650_s5] ss:$0 sm:$0xff] }
   0x8   :  { %453 = vmatprep.subr.bf16.mxu0 %v489_v0  ;;  %436 = vmatpush3.bf16.msra.mxu1 %v470_v5  ;;  %v399_v45 = vld [vmem:[%s651_s6] ss:$0 sm:$0xff] }
   0x9   :  { %437 = vmatprep.subr.bf16.mxu1 %v489_v0  ;;  %v477_v56 = vld [vmem:[%s652_s9] sm:$0xff]  }
   0xa   :  { %430 = vmatmul.mubr.msk.bf16.vlgmr.msra.gmra.mrb[0].mxu0 %vm66_vm1, %v42_v6 }
   0xb   :  { %461 = vmatprep.mubr.msk.bf16.mxu0 %vm490_vm0, %v489_v0  ;;  %454 = vmatpush3.bf16.msra.mxu0 %v477_v56 }
   0xc   :  { %438 = vmatpush3.bf16.msra.mxu1 %v471_v7  ;;  %455 = vmatprep.subr.bf16.mxu0 %v489_v0 }
   0xd   :  { %439 = vmatprep.subr.bf16.mxu1 %v489_v0 }
   0xf   :  { %456 = vmatpush3.bf16.msra.mxu0 %v478_v57 }
  0x10   :  { %440 = vmatpush3.bf16.msra.mxu1 %v472_v8  ;;  %457 = vmatprep.subr.bf16.mxu0 %v489_v0  ;;  %v401_v8 = vld [vmem:[%s655_s8] ss:$0 sm:$0xff] }
  0x11   :  { %441 = vmatprep.subr.bf16.mxu1 %v489_v0 }
  0x13   :  { %458 = vmatpush3.bf16.msra.mxu0 %v479_v58 }
  0x14   :  { %442 = vmatpush3.bf16.msra.mxu1 %v473_v9  ;;  %459 = vmatprep.subr.bf16.mxu0 %v489_v0 }
  0x15   :  { %443 = vmatprep.subr.bf16.mxu1 %v489_v0 }
  0x17   :  { %460 = vmatpush3.bf16.msra.mxu0 %v480_v59 }
  0x18   :  { %444 = vmatpush3.bf16.msra.mxu1 %v474_v10 }
  0x19   :  { %445 = vmatprep.subr.bf16.mxu1 %v489_v0 }
  0x1c   :  { %446 = vmatpush3.bf16.msra.mxu1 %v475_v11 }
  0x1d   :  { %447 = vmatprep.subr.bf16.mxu1 %v489_v0  ;;  %v400_v0 = vld [vmem:[%s654_s7] ss:$0 sm:$0xff] }
  0x20   :  { %448 = vmatpush3.bf16.msra.mxu1 %v476_v12  ;;  %v402_v12 = vld [vmem:[#allocation2] ss:$0 sm:$0xff] }
  0xdd   :  { %v104_v14 = vpop.f32.mrb[0].mxu0 }
  0xde   :  { %v105_v15 = vadd.f32 %v385_v13, %v104_v14  ;;  %v431_v16 = vpop.f32.mrb[1].mxu0 }
  0xdf   :  { %v107_v17 = vpop.f32.mrb[2].mxu0 }
  0xe0   :  { %v110_v18 = vmul.f32 0.5, %v105_v15  ;;  %v432_v19 = vpop.f32.mrb[3].mxu0 }
  0xe2   :  { %481 = vtanh.f32 %v110_v18 }
  0xec   :  { %v482_v20 = vpop.eup %481 }
  0xed   :  { %v112_v21 = vadd.f32 1.0, %v482_v20 }
  0xef   :  { %v113_v22 = vmul.f32 0.5, %v112_v21 }
  0xf1   :  { %v114_v23 = vmul.f32 %v113_v22, %v105_v15 }
  0xf3   :  { %v115_v24 = vpack.c.bf16 %v114_v23, %v114_v23 }
  0xf5   :  { %450 = vmatmul.mubr.bf16.vlgmr.msra.gmra.mrb[0].mxu1 %v115_v24 }
 0x1c8   :  { %v221_v26 = vpop.f32.mrb[0].mxu1 }
 0x1c9   :  { %v222_v27 = vadd.f32 %v389_v25, %v221_v26  ;;  %v451_v28 = vpop.f32.mrb[1].mxu1 }
 0x1ca   :  { %v224_v29 = vpop.f32.mrb[2].mxu1 }
 0x1cb   :  { %v452_v30 = vpop.f32.mrb[3].mxu1  ;;  %v230_v31 = vsel %vm229_vm2, %v222_v27, 0.0  ;;  %v235_v32 = vmul.f32 %v222_v27, %v222_v27 }
 0x1cc   :  { %231 = vadd.xlane.f32.xlu0 %v230_v31 }
 0x1cd   :  { %v236_v33 = vsel %vm229_vm2, %v235_v32, 0.0 }
 0x1d0   :  { %237 = vadd.xlane.f32.xlu0 %v236_v33 }
 0x259   :  { %v232_v34 = vpop.xlane.xlu0 %231 }
 0x25a   :  { %v234_v35 = vmul.f32 0.015625, %v232_v34 }
 0x25c   :  { %v240_v37 = vmul.f32 %v234_v35, %v234_v35  ;;  %v244_v41 = vsub.f32 %v222_v27, %v234_v35 }
 0x25d   :  { %v238_v36 = vpop.xlane.xlu0 %237 }
 0x25e   :  { %v239_v38 = vmul.f32 0.015625, %v238_v36 }
 0x260   :  { %v241_v39 = vsub.f32 %v239_v38, %v240_v37 }
 0x262   :  { %v242_v40 = vadd.f32 1e-05, %v241_v39 }
 0x264   :  { %483 = vrsqrt.f32 %v242_v40 }
 0x26e   :  { %v484_v42 = vpop.eup %483 }
 0x26f   :  { %v245_v44 = vmul.f32 %v484_v42, %v244_v41 }
 0x271   :  { %v252_v46 = vmul.f32 %v398_v43, %v245_v44 }
 0x273   :  { %v259_v47 = vadd.f32 %v399_v45, %v252_v46 }
 0x275   :  { %v260_v48 = vmul.f32 0.5, %v259_v47 }
 0x277   :  { %485 = vtanh.f32 %v260_v48 }
 0x281   :  { %v486_v49 = vpop.eup %485 }
 0x282   :  { %v262_v50 = vadd.f32 1.0, %v486_v49 }
 0x284   :  { %v263_v51 = vmul.f32 0.5, %v262_v50 }
 0x286   :  { %v264_v52 = vmul.f32 %v263_v51, %v259_v47 }
 0x288   :  { %v267_v53 = vsel %vm229_vm2, %v264_v52, 0.0  ;;  %v271_v54 = vmul.f32 %v264_v52, %v264_v52 }
 0x289   :  { %268 = vadd.xlane.f32.xlu1 %v267_v53 }
 0x28a   :  { %v272_v55 = vsel %vm229_vm2, %v271_v54, 0.0 }
 0x28d   :  { %273 = vadd.xlane.f32.xlu1 %v272_v55 }
 0x316   :  { %v269_v61 = vpop.xlane.xlu1 %268 }
 0x317   :  { %v270_v62 = vmul.f32 0.015625, %v269_v61 }
 0x319   :  { %v276_v1 = vmul.f32 %v270_v62, %v270_v62  ;;  %v280_v5 = vsub.f32 %v264_v52, %v270_v62 }
 0x31a   :  { %v274_v63 = vpop.xlane.xlu1 %273 }
 0x31b   :  { %v275_v2 = vmul.f32 0.015625, %v274_v63 }
 0x31d   :  { %v277_v3 = vsub.f32 %v275_v2, %v276_v1 }
 0x31f   :  { %v278_v4 = vadd.f32 1e-05, %v277_v3 }
 0x321   :  { %487 = vrsqrt.f32 %v278_v4 }
 0x32b   :  { %v488_v6 = vpop.eup %487 }
 0x32c   :  { %v281_v7 = vmul.f32 %v488_v6, %v280_v5 }
 0x32e   :  { %v288_v9 = vmul.f32 %v400_v0, %v281_v7 }
 0x330   :  { %v295_v10 = vadd.f32 %v401_v8, %v288_v9 }
 0x332   :  { %v296_v11 = vpack.c.bf16 %v295_v10, %v295_v10 }
 0x334   :  { %462 = vmatmul.mubr.msk.bf16.vlgmr.msra.gmra.mrb[4].mxu0 %vm229_vm2, %v296_v11 }
 0x407   :  { %v373_v13 = vpop.f32.mrb[4].mxu0 }
 0x408   :  { %v374_v14 = vadd.f32 %v402_v12, %v373_v13  ;;  %v463_v15 = vpop.f32.mrb[5].mxu0 }
 0x409   :  { %v376_v16 = vpop.f32.mrb[6].mxu0 }
 0x40a   :  { %380 = vst.msk [vmem:[%s656_s11] sm:$0xff] %vm379_vm3, %v374_v14  ;;  %v464_v17 = vpop.f32.mrb[7].mxu0 }

</bundles_post_ra>
